<compile_context>
chip_gen: v7x
topology: tpu7x:2x2x1
jax: 0.10.0
libtpu: 0.0.40
codegen_flags: <defaults>
</compile_context>

<pallas_src>
import functools

import jax
import jax.numpy as jnp
from jax.experimental import pallas as pl
from jax.experimental.pallas import tpu as pltpu

_LANE = 128


def _round_up(x, m):
    return (x + m - 1) // m * m


def _gcgan_kernel(x_ref, w1_ref, b1_ref, w2_ref, b2_ref, o_ref):
    # Layer 1: MXU matmul with f32 accumulation; bias add + ReLU on the VPU in f32.
    h = jnp.dot(x_ref[...], w1_ref[...], preferred_element_type=jnp.float32)
    h = jnp.maximum(h + b1_ref[...], 0.0)
    # Layer 2: downcast hidden activations only when the bf16 weight path is
    # enabled (deliberate, not an accidental no-op cast).
    if w2_ref.dtype != jnp.float32:
        h = h.astype(w2_ref.dtype)
    y = jnp.dot(h, w2_ref[...], preferred_element_type=jnp.float32)
    o_ref[...] = (y + b2_ref[...]).astype(o_ref.dtype)


def prepare_params(w1, b1, w2, b2, *, use_bf16=False):
    """One-time padding/casting of the (in, out)-layout weights.

    Zero padding is exact: padded hidden units see zero weights & bias
    (relu(0)=0 -> contribute nothing); padded output columns are sliced off.
    Returns (w1_p, b1_p, w2_p, b2_p) ready to be fed to g_cgan_forward.
    """
    c_in, latent = w1.shape
    seq = w2.shape[1]
    latent_p = _round_up(latent, _LANE)
    seq_p = _round_up(seq, _LANE)
    wdt = jnp.bfloat16 if use_bf16 else jnp.float32
    w1_p = jnp.zeros((c_in, latent_p), wdt).at[:, :latent].set(w1.astype(wdt))
    b1_p = jnp.zeros((1, latent_p), jnp.float32).at[:, :latent].set(b1.astype(jnp.float32))
    w2_p = jnp.zeros((latent_p, seq_p), wdt).at[:latent, :seq].set(w2.astype(wdt))
    b2_p = jnp.zeros((1, seq_p), jnp.float32).at[:, :seq].set(b2.astype(jnp.float32))
    return w1_p, b1_p, w2_p, b2_p


def g_cgan_forward(condition, w1_p, b1_p, w2_p, b2_p, *, seq,
                   block_b=2048, out_bf16=False, return_padded=False,
                   min_split_rows=512):
    """G_CGAN forward: relu(condition @ w1 + b1) @ w2 + b2.

    condition: (B, c_in) f32 (cast to bf16 in-wrapper when params are bf16).
    w*_p/b*_p: pre-padded params from prepare_params().
    Returns (B, seq) unless return_padded=True (then the padded slab).
    """
    B, c_in = condition.shape
    latent_p = w1_p.shape[1]
    seq_p = w2_p.shape[1]
    in_dtype = w1_p.dtype
    use_bf16 = in_dtype == jnp.bfloat16
    out_dtype = jnp.bfloat16 if (use_bf16 and out_bf16) else jnp.float32
    sub = 16 if use_bf16 else 8

    # Batch tile: sublane aligned, capped at block_b.  If a single tile would
    # cover a large batch, split into two grid steps so both v7x TensorCores
    # get work ("parallel" batch axis); harmless elsewhere.
    tb = min(_round_up(block_b, sub), _round_up(B, sub))
    if B >= min_split_rows and _round_up(B, sub) <= tb:
        tb = _round_up((B + 1) // 2, sub)
    b_p = _round_up(B, tb)
    grid = (b_p // tb,)

    # Only per-call data prep: cast / batch-pad the activations when needed.
    x_p = condition.astype(in_dtype) if condition.dtype != in_dtype else condition
    if b_p != B:
        x_p = jnp.zeros((b_p, c_in), in_dtype).at[:B].set(x_p)

    in_sz = jnp.dtype(in_dtype).itemsize
    out_sz = jnp.dtype(out_dtype).itemsize
    cost = pl.CostEstimate(
        flops=2 * b_p * (c_in * latent_p + latent_p * seq_p),
        transcendentals=0,
        bytes_accessed=(b_p * c_in + w1_p.size + w2_p.size) * in_sz
        + (b1_p.size + b2_p.size) * 4
        + b_p * seq_p * out_sz,
    )

    # Raise the scoped VMEM limit only when very large batch tiles could trip
    # v5e's 16 MiB default (double-buffered x/out + f32 intermediates).
    vmem_est = (2 * tb * c_in * in_sz
                + 2 * tb * seq_p * out_sz
                + (w1_p.size + w2_p.size) * in_sz
                + (b1_p.size + b2_p.size) * 4
                + tb * (latent_p + seq_p) * 4)
    compiler_kwargs = dict(dimension_semantics=("parallel",))
    if vmem_est > 12 * 1024 * 1024:
        compiler_kwargs["vmem_limit_bytes"] = int(min(2 * vmem_est, 64 * 1024 * 1024))

    out = pl.pallas_call(
        _gcgan_kernel,
        out_shape=jax.ShapeDtypeStruct((b_p, seq_p), out_dtype),
        grid=grid,
        in_specs=[
            # Streamed per grid step (double-buffered by BlockSpec).
            pl.BlockSpec((tb, c_in), lambda i: (i, 0)),
            # Weights & biases: same block every step -> VMEM-resident.
            pl.BlockSpec((c_in, latent_p), lambda i: (0, 0)),
            pl.BlockSpec((1, latent_p), lambda i: (0, 0)),
            pl.BlockSpec((latent_p, seq_p), lambda i: (0, 0)),
            pl.BlockSpec((1, seq_p), lambda i: (0, 0)),
        ],
        out_specs=pl.BlockSpec((tb, seq_p), lambda i: (i, 0)),
        compiler_params=pltpu.CompilerParams(**compiler_kwargs),
        cost_estimate=cost,
    )(x_p, w1_p, b1_p, w2_p, b2_p)

    if return_padded:
        # Padded rows/cols are NOT zero; consumers must slice/ignore them.
        return out
    return out[:B, :seq]


def init_params(key, condition_size=10, latent_ratio=10, seq_size=50):
    """PyTorch-style init: U(-1/sqrt(fan_in), 1/sqrt(fan_in)); weights stored
    already transposed to (in, out) layout for the kernel."""
    latent_size = condition_size * latent_ratio
    k1, k2, k3, k4 = jax.random.split(key, 4)
    bound1 = 1.0 / jnp.sqrt(condition_size)
    bound2 = 1.0 / jnp.sqrt(latent_size)
    w1 = jax.random.uniform(k1, (condition_size, latent_size), jnp.float32,
                            -bound1, bound1)
    b1 = jax.random.uniform(k2, (latent_size,), jnp.float32, -bound1, bound1)
    w2 = jax.random.uniform(k3, (latent_size, seq_size), jnp.float32,
                            -bound2, bound2)
    b2 = jax.random.uniform(k4, (seq_size,), jnp.float32, -bound2, bound2)
    return w1, b1, w2, b2


if __name__ == "__main__":
    key = jax.random.PRNGKey(0)
    kp, kx = jax.random.split(key)

    condition_size, latent_ratio, seq_size = 10, 10, 50
    batch = 8

    w1, b1, w2, b2 = init_params(kp, condition_size, latent_ratio, seq_size)
    condition = jax.random.normal(kx, (batch, condition_size), jnp.float32)

    # Pure-JAX reference.
    ref = jnp.maximum(condition @ w1 + b1, 0.0) @ w2 + b2

    # --- f32 MXU-input path (bit-comparable to the reference) ---------------
    params_f32 = prepare_params(w1, b1, w2, b2, use_bf16=False)
    fwd_f32 = jax.jit(functools.partial(g_cgan_forward, seq=seq_size))
    out_f32 = jax.block_until_ready(fwd_f32(condition, *params_f32))
    assert out_f32.shape == (batch, seq_size)
    assert jnp.allclose(out_f32, ref, atol=1e-5, rtol=1e-5)

    # --- bf16 MXU-input path with bf16 output (mem-bound fast path) ---------
    params_bf16 = prepare_params(w1, b1, w2, b2, use_bf16=True)
    fwd_bf16 = jax.jit(functools.partial(g_cgan_forward, seq=seq_size, out_bf16=True))
    out_bf16 = jax.block_until_ready(fwd_bf16(condition, *params_bf16))
    assert out_bf16.shape == (batch, seq_size)
    assert out_bf16.dtype == jnp.bfloat16
    assert jnp.allclose(out_bf16.astype(jnp.float32), ref, atol=5e-2, rtol=5e-2)

    # --- padded-output path (skips the post-kernel slice copy) --------------
    fwd_pad = jax.jit(functools.partial(g_cgan_forward, seq=seq_size, return_padded=True))
    out_pad = jax.block_until_ready(fwd_pad(condition, *params_f32))
    assert out_pad.shape[0] >= batch and out_pad.shape[1] % 128 == 0
    assert jnp.allclose(out_pad[:batch, :seq_size], ref, atol=1e-5, rtol=1e-5)

    print("KERNEL_OK")
</pallas_src>

<mosaic_0001>
module attributes {stable_mosaic.version = 11 : i64} {
  func.func @_gcgan_kernel(%arg0: i32, %arg1: memref<8x10xf32, #tpu.memory_space<vmem>>, %arg2: memref<10x128xf32, #tpu.memory_space<vmem>>, %arg3: memref<1x128xf32, #tpu.memory_space<vmem>>, %arg4: memref<128x128xf32, #tpu.memory_space<vmem>>, %arg5: memref<1x128xf32, #tpu.memory_space<vmem>>, %arg6: memref<8x128xf32, #tpu.memory_space<vmem>>) attributes {dimension_semantics = [#tpu.dimension_semantics<parallel>], iteration_bounds = array<i64: 1>, scalar_prefetch = 0 : i64, scratch_operands = 0 : i64, tpu.core_type = #tpu.core_type<tc>, window_params = [{transform_indices = @transform_0, window_bounds = array<i64: 8, 10>}, {pipeline_mode = #tpu.pipeline_mode<synchronous>, transform_indices = @transform_1, window_bounds = array<i64: 10, 128>}, {pipeline_mode = #tpu.pipeline_mode<synchronous>, transform_indices = @transform_2, window_bounds = array<i64: 1, 128>}, {pipeline_mode = #tpu.pipeline_mode<synchronous>, transform_indices = @transform_3, window_bounds = array<i64: 128, 128>}, {pipeline_mode = #tpu.pipeline_mode<synchronous>, transform_indices = @transform_4, window_bounds = array<i64: 1, 128>}, {transform_indices = @transform_5, window_bounds = array<i64: 8, 128>}]} {
    %c0 = arith.constant 0 : index
    %c0_0 = arith.constant 0 : index
    %0 = vector.load %arg1[%c0, %c0_0] : memref<8x10xf32, #tpu.memory_space<vmem>>, vector<8x10xf32>
    %c0_1 = arith.constant 0 : index
    %c0_2 = arith.constant 0 : index
    %1 = vector.load %arg2[%c0_1, %c0_2] : memref<10x128xf32, #tpu.memory_space<vmem>>, vector<10x128xf32>
    %cst = arith.constant dense<0.000000e+00> : vector<8x128xf32>
    %2 = tpu.matmul %0, %1, %cst {dimension_numbers = #tpu.dot_dimension_numbers<[1], [0], [0], [1], [0, 0, 1, 1], [], []>} : vector<8x10xf32>, vector<10x128xf32>, vector<8x128xf32> -> vector<8x128xf32>
    %c0_3 = arith.constant 0 : index
    %c0_4 = arith.constant 0 : index
    %3 = vector.load %arg3[%c0_3, %c0_4] : memref<1x128xf32, #tpu.memory_space<vmem>>, vector<1x128xf32>
    %4 = vector.broadcast %3 : vector<1x128xf32> to vector<8x128xf32>
    %5 = arith.addf %2, %4 : vector<8x128xf32>
    %cst_5 = arith.constant 0.000000e+00 : f32
    %6 = vector.broadcast %cst_5 : f32 to vector<8x128xf32>
    %7 = arith.maximumf %5, %6 : vector<8x128xf32>
    %c0_6 = arith.constant 0 : index
    %c0_7 = arith.constant 0 : index
    %8 = vector.load %arg4[%c0_6, %c0_7] : memref<128x128xf32, #tpu.memory_space<vmem>>, vector<128x128xf32>
    %cst_8 = arith.constant dense<0.000000e+00> : vector<8x128xf32>
    %9 = tpu.matmul %7, %8, %cst_8 {dimension_numbers = #tpu.dot_dimension_numbers<[1], [0], [0], [1], [0, 0, 1, 1], [], []>} : vector<8x128xf32>, vector<128x128xf32>, vector<8x128xf32> -> vector<8x128xf32>
    %c0_9 = arith.constant 0 : index
    %c0_10 = arith.constant 0 : index
    %10 = vector.load %arg5[%c0_9, %c0_10] : memref<1x128xf32, #tpu.memory_space<vmem>>, vector<1x128xf32>
    %11 = vector.broadcast %10 : vector<1x128xf32> to vector<8x128xf32>
    %12 = arith.addf %9, %11 : vector<8x128xf32>
    %c0_11 = arith.constant 0 : index
    %c0_12 = arith.constant 0 : index
    %13 = vector.load %arg6[%c0_11, %c0_12] : memref<8x128xf32, #tpu.memory_space<vmem>>, vector<8x128xf32>
    tpu.vector_store %arg6[%c0_11, %c0_12], %12 {strides = array<i32>} : memref<8x128xf32, #tpu.memory_space<vmem>>, vector<8x128xf32>,
    return
  }
  func.func @transform_0(%arg0: i32) -> (i32, i32) {
    %c0_i32 = arith.constant 0 : i32
    %c0_i32_0 = arith.constant 0 : i32
    return %arg0, %c0_i32 : i32, i32
  }
  func.func @transform_1(%arg0: i32) -> (i32, i32) {
    %c0_i32 = arith.constant 0 : i32
    %c0_i32_0 = arith.constant 0 : i32
    %c0_i32_1 = arith.constant 0 : i32
    return %c0_i32, %c0_i32_0 : i32, i32
  }
  func.func @transform_2(%arg0: i32) -> (i32, i32) {
    %c0_i32 = arith.constant 0 : i32
    %c0_i32_0 = arith.constant 0 : i32
    %c0_i32_1 = arith.constant 0 : i32
    return %c0_i32, %c0_i32_0 : i32, i32
  }
  func.func @transform_3(%arg0: i32) -> (i32, i32) {
    %c0_i32 = arith.constant 0 : i32
    %c0_i32_0 = arith.constant 0 : i32
    %c0_i32_1 = arith.constant 0 : i32
    return %c0_i32, %c0_i32_0 : i32, i32
  }
  func.func @transform_4(%arg0: i32) -> (i32, i32) {
    %c0_i32 = arith.constant 0 : i32
    %c0_i32_0 = arith.constant 0 : i32
    %c0_i32_1 = arith.constant 0 : i32
    return %c0_i32, %c0_i32_0 : i32, i32
  }
  func.func @transform_5(%arg0: i32) -> (i32, i32) {
    %c0_i32 = arith.constant 0 : i32
    %c0_i32_0 = arith.constant 0 : i32
    return %arg0, %c0_i32 : i32, i32
  }
}

</mosaic_0001>

<bundles_post_ra>
// kernel: g_cgan_forward.1
= control target key start
LH: loop header
LB: loop body
LE: loop exit
PB: predicated region body
PF: predicated region fallthrough
CT: control target
= control target key end

     0   :  { %10 = vsyncpa [#allocation3], 0  ;;  %s557_s0 = inlined_call_operand.hbm [shape: f32[8,10], index: 0, kind: input, shape index: {}]   ;;  %s558_s1 = inlined_call_operand.hbm [shape: f32[10,128], index: 1, kind: input, shape index: {}]   ;;  %s559_s2 = inlined_call_operand.vmem [shape: f32[1,128], index: 2, kind: input, shape index: {}]   ;;  %s560_s3 = inlined_call_operand.hbm [shape: f32[128,128], index: 3, kind: input, shape index: {}]   ;;  %s561_s4 = inlined_call_operand.vmem [shape: f32[1,128], index: 4, kind: input, shape index: {}]   ;;  %s562_s5 = inlined_call_operand.hbm [shape: f32[8,128], index: 5, kind: output, shape index: {}]  }
   0x1   :  { %11 = vsyncpa [#allocation6], 0 }
   0x2   :  { %12 = vsyncpa [#allocation4], 0  ;;  %s457_s18 = smov [#allocation5]   ;;  %s363_s22 = scalar_lea.hbm %s558_s1, 256 }
   0x3   :  { %s28_s19 = sshll.u32 %s457_s18, 4  ;;  %p364_p0 = scmp.ne.s32.totalorder %s558_s1, %s363_s22  ;;  %s29_s19 = int_to_ptr.vmem [resolvable:$true] %s28_s19 }
   0x4   :  { %p367_p1 = scmp.lt.u32.totalorder %s363_s22, %s558_s1 }
   0x6   :  { %p369_p2 = pnand %p367_p1, %p364_p0 }
   0x8   :  { %372 = shalt.err (!%p369_p2)
}
   0x9   :  { %s373_s27 = scalar_lea.vmem %s29_s19, 256  ;;  %p378_p4 = scmp.lt.s32.totalorder %s29_s19, %s29_s19 }
   0xa   :  { %p374_p3 = scmp.ne.s32.totalorder %s29_s19, %s373_s27  ;;  %p379_p5 = scmp.lt.s32.totalorder %s373_s27, %s373_s27 }
   0xc   :  { %p380_p6 = por %p379_p5, %p378_p4 }
   0xe   :  { %p381_p7 = pnand %p380_p6, %p374_p3 }
  0x10   :  { %384 = shalt.err (!%p381_p7)
}
  0x11   :  { %s458_s28 = smov 128   ;;  %s459_s29 = smov 8  }
  0x12   :  { %34 = dma.hbm_to_vmem [thread:$0]  %s558_s1, 256, %s29_s19, [#allocation6], %s458_s28, %s458_s28, %s459_s29  }
  0x13   :  { %s460_s7 = smov [#allocation2]   ;;  %s461_s9 = smov [#allocation7]  }
  0x14   :  { %s19_s8 = sshll.u32 %s460_s7, 4  ;;  %s42_s10 = sshll.u32 %s461_s9, 4  ;;  %s20_s8 = int_to_ptr.vmem [resolvable:$true] %s19_s8  ;;  %s43_s10 = int_to_ptr.vmem [resolvable:$true] %s42_s10 }
  0x15   :  { %s385_s13 = scalar_lea.hbm %s557_s0, 128 }
  0x16   :  { %p386_p8 = scmp.ne.s32.totalorder %s557_s0, %s385_s13  ;;  %p389_p9 = scmp.lt.u32.totalorder %s385_s13, %s557_s0 }
  0x18   :  { %p391_p10 = pnand %p389_p9, %p386_p8 }
  0x1a   :  { %394 = shalt.err (!%p391_p10)
}
  0x1b   :  { %s395_s1 = scalar_lea.vmem %s20_s8, 128  ;;  %p400_p12 = scmp.lt.s32.totalorder %s20_s8, %s20_s8 }
  0x1c   :  { %p396_p11 = scmp.ne.s32.totalorder %s20_s8, %s395_s1  ;;  %p401_p13 = scmp.lt.s32.totalorder %s395_s1, %s395_s1 }
  0x1e   :  { %p402_p0 = por %p401_p13, %p400_p12 }
  0x20   :  { %p403_p1 = pnand %p402_p0, %p396_p11 }
  0x22   :  { %406 = shalt.err (!%p403_p1)
}
  0x23   :  { %22 = dma.hbm_to_vmem [thread:$0]  %s557_s0, 128, %s20_s8, [#allocation3]  }
  0x24   :  { %s407_s22 = scalar_lea.hbm %s560_s3, 2048 }
  0x25   :  { %p408_p2 = scmp.ne.s32.totalorder %s560_s3, %s407_s22  ;;  %p411_p3 = scmp.lt.u32.totalorder %s407_s22, %s560_s3 }
  0x27   :  { %p413_p4 = pnand %p411_p3, %p408_p2 }
  0x29   :  { %416 = shalt.err (!%p413_p4)
}
  0x2a   :  { %s417_s27 = scalar_lea.vmem %s43_s10, 2048  ;;  %p422_p6 = scmp.lt.s32.totalorder %s43_s10, %s43_s10 }
  0x2b   :  { %p418_p5 = scmp.ne.s32.totalorder %s43_s10, %s417_s27  ;;  %p423_p7 = scmp.lt.s32.totalorder %s417_s27, %s417_s27 }
  0x2d   :  { %p424_p8 = por %p423_p7, %p422_p6 }
  0x2f   :  { %p425_p9 = pnand %p424_p8, %p418_p5 }
  0x31   :  { %428 = shalt.err (!%p425_p9)
}
  0x32   :  { %48 = dma.hbm_to_vmem [thread:$0]  %s560_s3, 2048, %s43_s10, [#allocation6], %s458_s28, %s458_s28, %s459_s29  }
  0x33   :  { %451 = dma.done.wait [#allocation3], 128  }
  0x34   :  { %452 = vsyncadd [#allocation3], 4294967168 }
  0x35   :  { %453 = dma.done.wait [#allocation6], 2304  }
  0x36   :  { %454 = vsyncadd [#allocation6], 4294964992  ;;  %v462_v0 = vmov 0.0|0.0   ;;  %vm463_vm0 = vmmov 0   ;;  %v464_v1 = vmov 0.0   ;;  %vm74_vm1 = vcmask 1041408  }
  0x37   :  { %325 = vmatprep.subr.bf16.mxu0 %v462_v0  ;;  %329 = vmatprep.subr.bf16.mxu1 %v462_v0  ;;  %v61_v2 = vld [vmem:[#allocation5] sm:$0xff]  ;;  %v62_v3 = vld [vmem:[#allocation5 + $0x8] sm:$0x3]  ;;  %vm465_vm2 = vmmov 1   ;;  %v149_v5 = vld [vmem:[#allocation7] sm:$0xff]  ;;  %vm70_vm4 = vcmask 80896  }
  0x38   :  { %287 = vmatprep.mubr.msk.f32.mxu0 %vm463_vm0, %v464_v1  ;;  %322 = vmatprep.mubr.msk.f32.mxu1 %vm463_vm0, %v464_v1  ;;  %vm327_vm3 = vmpackc.low %vm74_vm1, %vm465_vm2  ;;  %v326_v4 = vpack.c.bf16 %v62_v3, %v61_v2  ;;  %v150_v6 = vld [vmem:[#allocation7 + $0x8] sm:$0xff]  ;;  %v151_v7 = vld [vmem:[#allocation7 + $0x10] sm:$0xff]  ;;  %s466_s7 = smov [#allocation8]  }
  0x39   :  { %v330_v8 = vpack.c.bf16 %v150_v6, %v149_v5  ;;  %v152_v9 = vld [vmem:[#allocation7 + $0x18] sm:$0xff]  ;;  %v60_v10 = vld [vmem:[#allocation2] sm:$0xff]  ;;  %v153_v12 = vld [vmem:[#allocation7 + $0x20] sm:$0xff]  ;;  %s249_s8 = sshll.u32 %s466_s7, 4  ;;  %s250_s8 = int_to_ptr.vmem [resolvable:$true] %s249_s8 }
  0x3a   :  { %328 = vmatpush3.bf16.msk.msra.mxu0 %vm327_vm3, %v326_v4  ;;  %v333_v11 = vpack.c.bf16 %v152_v9, %v151_v7  ;;  %v154_v13 = vld [vmem:[#allocation7 + $0x28] sm:$0xff]  ;;  %v155_v15 = vld [vmem:[#allocation7 + $0x30] sm:$0xff]  ;;  %v156_v16 = vld [vmem:[#allocation7 + $0x38] sm:$0xff]  ;;  %s429_s9 = scalar_lea.vmem %s250_s8, 128  ;;  %p434_p11 = scmp.lt.s32.totalorder %s250_s8, %s250_s8 }
  0x3b   :  { %331 = vmatpush3.bf16.msra.mxu1 %v330_v8  ;;  %v336_v14 = vpack.c.bf16 %v154_v13, %v153_v12  ;;  %v339_v17 = vpack.c.bf16 %v156_v16, %v155_v15  ;;  %v157_v18 = vld [vmem:[#allocation7 + $0x40] sm:$0xff]  ;;  %v158_v19 = vld [vmem:[#allocation7 + $0x48] sm:$0xff]  ;;  %v159_v21 = vld [vmem:[#allocation7 + $0x50] sm:$0xff]  ;;  %p430_p10 = scmp.ne.s32.totalorder %s250_s8, %s429_s9  ;;  %p435_p12 = scmp.lt.s32.totalorder %s429_s9, %s429_s9 }
  0x3c   :  { %332 = vmatprep.subr.bf16.mxu1 %v462_v0  ;;  %v342_v20 = vpack.c.bf16 %v158_v19, %v157_v18  ;;  %v160_v22 = vld [vmem:[#allocation7 + $0x58] sm:$0xff]  ;;  %v161_v24 = vld [vmem:[#allocation7 + $0x60] sm:$0xff]  ;;  %v162_v25 = vld [vmem:[#allocation7 + $0x68] sm:$0xff] }
  0x3d   :  { %288 = vmatmul.mubr.msk.f32.vlgmr.msra.gmra.mrb[0].mxu0 %vm70_vm4, %v60_v10  ;;  %v345_v23 = vpack.c.bf16 %v160_v22, %v159_v21  ;;  %v348_v26 = vpack.c.bf16 %v162_v25, %v161_v24  ;;  %v163_v27 = vld [vmem:[#allocation7 + $0x70] sm:$0xff]  ;;  %v164_v28 = vld [vmem:[#allocation7 + $0x78] sm:$0xff]  ;;  %v259_v30 = vld [vmem:[%s559_s2] ss:$0 sm:$0xff]  ;;  %p436_p13 = por %p435_p12, %p434_p11 }
  0x3e   :  { %v351_v29 = vpack.c.bf16 %v164_v28, %v163_v27  ;;  %v262_v35 = vld [vmem:[%s561_s4] ss:$0 sm:$0xff] }
  0x3f   :  { %334 = vmatpush3.bf16.msra.mxu1 %v333_v11  ;;  %p437_p0 = pnand %p436_p13, %p430_p10 }
  0x40   :  { %335 = vmatprep.subr.bf16.mxu1 %v462_v0 }
  0x43   :  { %337 = vmatpush3.bf16.msra.mxu1 %v336_v14 }
  0x44   :  { %338 = vmatprep.subr.bf16.mxu1 %v462_v0 }
  0x47   :  { %340 = vmatpush3.bf16.msra.mxu1 %v339_v17 }
  0x48   :  { %341 = vmatprep.subr.bf16.mxu1 %v462_v0 }
  0x4b   :  { %343 = vmatpush3.bf16.msra.mxu1 %v342_v20 }
  0x4c   :  { %344 = vmatprep.subr.bf16.mxu1 %v462_v0 }
  0x4f   :  { %346 = vmatpush3.bf16.msra.mxu1 %v345_v23 }
  0x50   :  { %347 = vmatprep.subr.bf16.mxu1 %v462_v0 }
  0x53   :  { %349 = vmatpush3.bf16.msra.mxu1 %v348_v26 }
  0x54   :  { %350 = vmatprep.subr.bf16.mxu1 %v462_v0 }
  0x57   :  { %352 = vmatpush3.bf16.msra.mxu1 %v351_v29 }
 0x110   :  { %v144_v31 = vpop.f32.mrb[0].mxu0 }
 0x111   :  { %v145_v32 = vadd.f32 %v259_v30, %v144_v31  ;;  %v289_v33 = vpop.f32.mrb[1].mxu0 }
 0x113   :  { %v148_v34 = vmax.f32 %v145_v32, 0.0 }
 0x115   :  { %323 = vmatmul.mubr.f32.vlgmr.msra.gmra.mrb[0].mxu1 %v148_v34 }
 0x1e8   :  { %v238_v36 = vpop.f32.mrb[0].mxu1 }
 0x1e9   :  { %v239_v37 = vadd.f32 %v262_v35, %v238_v36  ;;  %v324_v38 = vpop.f32.mrb[1].mxu1 }
 0x1eb   :  { %242 = vst [vmem:[#allocation8] sm:$0xff] %v239_v37 }
 0x1ec   :  { %440 = shalt.err (!%p437_p0)
}
 0x1ed   :  { %s441_s11 = scalar_lea.hbm %s562_s5, 128 }
 0x1ee   :  { %p442_p1 = scmp.ne.s32.totalorder %s562_s5, %s441_s11  ;;  %p445_p2 = scmp.lt.u32.totalorder %s441_s11, %s562_s5 }
 0x1f0   :  { %p447_p3 = pnand %p445_p2, %p442_p1 }
 0x1f2   :  { %450 = shalt.err (!%p447_p3)
}
 0x1f3   :  { %252 = dma.vmem_to_hbm [thread:$0]  %s250_s8, 128, %s562_s5, [#allocation4]  }
 0x1f4   :  { %455 = dma.done.wait [#allocation4], 128  }
 0x1f5   :  { %456 = vsyncadd [#allocation4], 4294967168 }
 0x1f6   :  { %256 = vsyncpa [#allocation3], 1 }
 0x1f7   :  { %257 = vsyncpa [#allocation6], 1 }
 0x1f8   :  { %258 = vsyncpa [#allocation4], 1 }

</bundles_post_ra>
